<compile_context>
chip_gen: v6e
topology: v6e:2x2x1
jax: 0.10.0
libtpu: 0.0.40
codegen_flags: <defaults>
</compile_context>

<pallas_src>
import math

import jax
import jax.numpy as jnp
import numpy as np
from jax.experimental import pallas as pl
from jax.experimental.pallas import tpu as pltpu

FEATURE_DIM = 32          # d_model
NUM_HEADS = 4
HEAD_DIM = FEATURE_DIM // NUM_HEADS


def _attn_prop_kernel(x_ref, s_ref,
                      wq_ref, bq_ref, wkv_ref, bkv_ref,
                      wm_ref, bm_ref,
                      w1_ref, b1_ref, w2_ref, b2_ref,
                      o_ref,
                      o_scr, cat_scr):
    # x_ref: (Bb, N, D)   s_ref: (Bb, M, D)   o_ref: (Bb, N, D)
    Bb, N, D = x_ref.shape
    M = s_ref.shape[1]
    dh = D // NUM_HEADS
    scale = 1.0 / math.sqrt(dh)

    x = x_ref[...]                                   # (Bb, N, D)
    s = s_ref[...]                                   # (Bb, M, D)
    xf = x.reshape(Bb * N, D)                        # token-flatten: fatter MXU matmuls
    sf = s.reshape(Bb * M, D)

    # ---- fused projections: 2 matmuls instead of 12 tiny per-head ones ----
    q = jnp.dot(xf, wq_ref[...], preferred_element_type=jnp.float32) + bq_ref[...]
    q = q.reshape(Bb, N, D)                          # head h -> columns [h*dh:(h+1)*dh]
    kv = jnp.dot(sf, wkv_ref[...], preferred_element_type=jnp.float32) + bkv_ref[...]
    kv = kv.reshape(Bb, M, 2 * D)                    # [:D]=K (head-contig), [D:]=V (head-contig)

    # ---- per-head scaled-dot-product attention (static unrolled loop, contiguous slices) ----
    for h in range(NUM_HEADS):
        lo = h * dh
        q_h = q[:, :, lo:lo + dh]                    # (Bb, N, dh)
        k_h = kv[:, :, lo:lo + dh]                   # (Bb, M, dh)
        v_h = kv[:, :, D + lo:D + lo + dh]           # (Bb, M, dh)

        sc = jnp.einsum('bnd,bmd->bnm', q_h, k_h,
                        preferred_element_type=jnp.float32) * scale      # (Bb, N, M)
        sc = sc - jnp.max(sc, axis=-1, keepdims=True)
        p = jnp.exp(sc)
        l = jnp.sum(p, axis=-1, keepdims=True)                           # (Bb, N, 1)
        o_h = jnp.einsum('bnm,bmd->bnd', p, v_h,
                         preferred_element_type=jnp.float32)             # (Bb, N, dh)
        # normalize after p@v (fewer elements) with the EUP approximate reciprocal
        o_scr[:, :, lo:lo + dh] = o_h * pl.reciprocal(l, approx=True)

    # ---- single merge matmul on the head-contiguous concat: (Bb*N, D) @ (D, D) ----
    msg = (jnp.dot(o_scr[...].reshape(Bb * N, D), wm_ref[...],
                   preferred_element_type=jnp.float32) + bm_ref[...])     # (Bb*N, D)

    # ---- MLP on cat([x, msg]) built in VMEM: two lane-offset stores, then 2 matmuls ----
    cat_scr[:, :, 0:D] = x
    cat_scr[:, :, D:2 * D] = msg.reshape(Bb, N, D)
    h1 = jnp.dot(cat_scr[...].reshape(Bb * N, 2 * D), w1_ref[...],
                 preferred_element_type=jnp.float32) + b1_ref[...]        # (Bb*N, 2D)
    h1 = jnp.maximum(h1, 0.0)                                             # ReLU
    out = jnp.dot(h1, w2_ref[...], preferred_element_type=jnp.float32) + b2_ref[...]
    o_ref[...] = out.reshape(Bb, N, D)


def prepare_params(params, num_heads=NUM_HEADS):
    """One-time weight fusion/permutation (outside the per-call path).

    torch `.view(B, dim, H, N)` maps channel c -> (d, h) with c = d*H + h (interleaved).
    We permute projection-weight COLUMNS (and merge-weight ROWS) so head h occupies the
    contiguous range [h*dh:(h+1)*dh]; K and V are fused into a single (D, 2D) weight.
    """
    wq_c, wk_c, wv_c, wm_c = (jnp.asarray(params[k]) for k in ('wq', 'wk', 'wv', 'wm'))
    D = wq_c.shape[0]
    dh = D // num_heads
    perm = np.array([d * num_heads + h for h in range(num_heads) for d in range(dh)],
                    dtype=np.int32)

    wq = wq_c.T[:, perm]                                             # (D, D)
    bq = jnp.asarray(params['bq'])[perm][None, :]                    # (1, D)
    wk = wk_c.T[:, perm]
    bk = jnp.asarray(params['bk'])[perm]
    wv = wv_c.T[:, perm]
    bv = jnp.asarray(params['bv'])[perm]
    wkv = jnp.concatenate([wk, wv], axis=1)                          # (D, 2D)
    bkv = jnp.concatenate([bk, bv])[None, :]                         # (1, 2D)
    wm = wm_c.T[perm, :]                                             # (D, D) rows permuted
    bm = jnp.asarray(params['bm'])[None, :]                          # (1, D)
    w1 = jnp.asarray(params['w1']).T                                 # (2D, 2D) rows: [x | msg]
    b1 = jnp.asarray(params['b1'])[None, :]                          # (1, 2D)
    w2 = jnp.asarray(params['w2']).T                                 # (2D, D)
    b2 = jnp.asarray(params['b2'])[None, :]                          # (1, D)
    return dict(wq=wq, bq=bq, wkv=wkv, bkv=bkv, wm=wm, bm=bm,
                w1=w1, b1=b1, w2=w2, b2=b2)


def _pick_block_b(batch, n, m):
    """Batch elements per grid step: amortize per-step overhead but keep >=2 parallel steps
    (v7x has 2 TensorCores)."""
    if batch < 4:
        return 1
    if (n % 8) or (m % 8):      # keep leading-dim folds layout-preserving
        return 1
    bb = batch // 2
    while batch % bb:
        bb -= 1
    return bb


def attentional_propagation(x_ncl, source_ncl, prep, *, block_b=None):
    """x_ncl: (B, D, N), source_ncl: (B, D, M) float32 (PyTorch NCL layout). Returns (B, D, N)."""
    B, D, N = x_ncl.shape
    M = source_ncl.shape[2]
    assert D % NUM_HEADS == 0

    # NCL -> NLC so channels ride the lane dim and every 1x1 conv is an MXU matmul.
    x = jnp.transpose(x_ncl, (0, 2, 1))        # (B, N, D)
    s = jnp.transpose(source_ncl, (0, 2, 1))   # (B, M, D)

    if block_b is None:
        block_b = _pick_block_b(B, N, M)
    assert B % block_b == 0
    grid_b = B // block_b

    def w_spec(a):                              # full, grid-invariant weight block
        return pl.BlockSpec(a.shape, lambda b: (0, 0))

    out = pl.pallas_call(
        _attn_prop_kernel,
        out_shape=jax.ShapeDtypeStruct((B, N, D), jnp.float32),
        grid_spec=pltpu.PrefetchScalarGridSpec(
            num_scalar_prefetch=0,
            grid=(grid_b,),
            in_specs=[
                pl.BlockSpec((block_b, N, D), lambda b: (b, 0, 0)),
                pl.BlockSpec((block_b, M, D), lambda b: (b, 0, 0)),
                w_spec(prep['wq']), w_spec(prep['bq']),
                w_spec(prep['wkv']), w_spec(prep['bkv']),
                w_spec(prep['wm']), w_spec(prep['bm']),
                w_spec(prep['w1']), w_spec(prep['b1']),
                w_spec(prep['w2']), w_spec(prep['b2']),
            ],
            out_specs=pl.BlockSpec((block_b, N, D), lambda b: (b, 0, 0)),
            scratch_shapes=[
                pltpu.VMEM((block_b, N, D), jnp.float32),       # head-contiguous attn output
                pltpu.VMEM((block_b, N, 2 * D), jnp.float32),   # cat([x, msg]) for the MLP
            ],
        ),
        compiler_params=pltpu.CompilerParams(dimension_semantics=("parallel",)),
    )(x, s, prep['wq'], prep['bq'], prep['wkv'], prep['bkv'],
      prep['wm'], prep['bm'], prep['w1'], prep['b1'], prep['w2'], prep['b2'])

    return jnp.transpose(out, (0, 2, 1))       # back to (B, D, N)


# ---------------- pure-JAX reference (mirrors the PyTorch forward exactly) ----------------
def reference(x, source, params):
    def conv1d(w, b, t):                       # 1x1 Conv1d in NCL
        return jnp.einsum('oi,bin->bon', w, t) + b[None, :, None]

    B, D, N = x.shape
    q = conv1d(params['wq'], params['bq'], x)
    k = conv1d(params['wk'], params['bk'], source)
    v = conv1d(params['wv'], params['bv'], source)
    q = q.reshape(B, HEAD_DIM, NUM_HEADS, N)
    k = k.reshape(B, HEAD_DIM, NUM_HEADS, -1)
    v = v.reshape(B, HEAD_DIM, NUM_HEADS, -1)
    scores = jnp.einsum('bdhn,bdhm->bhnm', q, k) / HEAD_DIM ** 0.5
    prob = jax.nn.softmax(scores, axis=-1)
    o = jnp.einsum('bhnm,bdhm->bdhn', prob, v).reshape(B, D, N)
    message = conv1d(params['wm'], params['bm'], o)
    cat = jnp.concatenate([x, message], axis=1)
    h1 = jax.nn.relu(conv1d(params['w1'], params['b1'], cat))
    return conv1d(params['w2'], params['b2'], h1)


if __name__ == "__main__":
    B, D, N, M = 2, FEATURE_DIM, 8, 16

    key = jax.random.PRNGKey(0)
    keys = jax.random.split(key, 16)
    sc = 0.1
    params = {
        'wq': jax.random.normal(keys[0], (D, D), jnp.float32) * sc,
        'bq': jax.random.normal(keys[1], (D,), jnp.float32) * sc,
        'wk': jax.random.normal(keys[2], (D, D), jnp.float32) * sc,
        'bk': jax.random.normal(keys[3], (D,), jnp.float32) * sc,
        'wv': jax.random.normal(keys[4], (D, D), jnp.float32) * sc,
        'bv': jax.random.normal(keys[5], (D,), jnp.float32) * sc,
        'wm': jax.random.normal(keys[6], (D, D), jnp.float32) * sc,
        'bm': jax.random.normal(keys[7], (D,), jnp.float32) * sc,
        'w1': jax.random.normal(keys[8], (2 * D, 2 * D), jnp.float32) * sc,
        'b1': jax.random.normal(keys[9], (2 * D,), jnp.float32) * sc,
        'w2': jax.random.normal(keys[10], (D, 2 * D), jnp.float32) * sc,
        'b2': jnp.zeros((D,), jnp.float32),   # nn.init.constant_(mlp[-1].bias, 0.0)
    }

    x = jax.random.normal(keys[11], (B, D, N), jnp.float32)
    source = jax.random.normal(keys[12], (B, D, M), jnp.float32)

    prep = prepare_params(params)             # one-time weight fusion / head permutation
    out = attentional_propagation(x, source, prep)
    out = jax.block_until_ready(out)

    ref = reference(x, source, params)
    # approx reciprocal in the softmax normalization -> compare at 1e-3
    np.testing.assert_allclose(np.asarray(out), np.asarray(ref), rtol=1e-3, atol=1e-3)

    print("KERNEL_OK")
</pallas_src>

<mosaic_0001>
module attributes {stable_mosaic.version = 11 : i64} {
  func.func @_attn_prop_kernel(%arg0: i32, %arg1: memref<1x8x32xf32, #tpu.memory_space<vmem>>, %arg2: memref<1x16x32xf32, #tpu.memory_space<vmem>>, %arg3: memref<32x32xf32, #tpu.memory_space<vmem>>, %arg4: memref<1x32xf32, #tpu.memory_space<vmem>>, %arg5: memref<32x64xf32, #tpu.memory_space<vmem>>, %arg6: memref<1x64xf32, #tpu.memory_space<vmem>>, %arg7: memref<32x32xf32, #tpu.memory_space<vmem>>, %arg8: memref<1x32xf32, #tpu.memory_space<vmem>>, %arg9: memref<64x64xf32, #tpu.memory_space<vmem>>, %arg10: memref<1x64xf32, #tpu.memory_space<vmem>>, %arg11: memref<64x32xf32, #tpu.memory_space<vmem>>, %arg12: memref<1x32xf32, #tpu.memory_space<vmem>>, %arg13: memref<1x8x32xf32, #tpu.memory_space<vmem>>, %arg14: memref<1x8x32xf32, #tpu.memory_space<vmem>>, %arg15: memref<1x8x64xf32, #tpu.memory_space<vmem>>) attributes {dimension_semantics = [#tpu.dimension_semantics<parallel>], iteration_bounds = array<i64: 2>, scalar_prefetch = 0 : i64, scratch_operands = 2 : i64, tpu.core_type = #tpu.core_type<tc>, window_params = [{transform_indices = @transform_0, window_bounds = array<i64: 1, 8, 32>}, {transform_indices = @transform_1, window_bounds = array<i64: 1, 16, 32>}, {pipeline_mode = #tpu.pipeline_mode<synchronous>, transform_indices = @transform_2, window_bounds = array<i64: 32, 32>}, {pipeline_mode = #tpu.pipeline_mode<synchronous>, transform_indices = @transform_3, window_bounds = array<i64: 1, 32>}, {pipeline_mode = #tpu.pipeline_mode<synchronous>, transform_indices = @transform_4, window_bounds = array<i64: 32, 64>}, {pipeline_mode = #tpu.pipeline_mode<synchronous>, transform_indices = @transform_5, window_bounds = array<i64: 1, 64>}, {pipeline_mode = #tpu.pipeline_mode<synchronous>, transform_indices = @transform_6, window_bounds = array<i64: 32, 32>}, {pipeline_mode = #tpu.pipeline_mode<synchronous>, transform_indices = @transform_7, window_bounds = array<i64: 1, 32>}, {pipeline_mode = #tpu.pipeline_mode<synchronous>, transform_indices = @transform_8, window_bounds = array<i64: 64, 64>}, {pipeline_mode = #tpu.pipeline_mode<synchronous>, transform_indices = @transform_9, window_bounds = array<i64: 1, 64>}, {pipeline_mode = #tpu.pipeline_mode<synchronous>, transform_indices = @transform_10, window_bounds = array<i64: 64, 32>}, {pipeline_mode = #tpu.pipeline_mode<synchronous>, transform_indices = @transform_11, window_bounds = array<i64: 1, 32>}, {transform_indices = @transform_12, window_bounds = array<i64: 1, 8, 32>}]} {
    %c0 = arith.constant 0 : index
    %c0_0 = arith.constant 0 : index
    %c0_1 = arith.constant 0 : index
    %0 = vector.load %arg1[%c0, %c0_0, %c0_1] : memref<1x8x32xf32, #tpu.memory_space<vmem>>, vector<1x8x32xf32>
    %c0_2 = arith.constant 0 : index
    %c0_3 = arith.constant 0 : index
    %c0_4 = arith.constant 0 : index
    %1 = vector.load %arg2[%c0_2, %c0_3, %c0_4] : memref<1x16x32xf32, #tpu.memory_space<vmem>>, vector<1x16x32xf32>
    %2 = vector.shape_cast %0 : vector<1x8x32xf32> to vector<8x32xf32>
    %3 = vector.shape_cast %1 : vector<1x16x32xf32> to vector<16x32xf32>
    %c0_5 = arith.constant 0 : index
    %c0_6 = arith.constant 0 : index
    %4 = vector.load %arg3[%c0_5, %c0_6] : memref<32x32xf32, #tpu.memory_space<vmem>>, vector<32x32xf32>
    %cst = arith.constant dense<0.000000e+00> : vector<8x32xf32>
    %5 = tpu.matmul %2, %4, %cst {dimension_numbers = #tpu.dot_dimension_numbers<[1], [0], [0], [1], [0, 0, 1, 1], [], []>} : vector<8x32xf32>, vector<32x32xf32>, vector<8x32xf32> -> vector<8x32xf32>
    %c0_7 = arith.constant 0 : index
    %c0_8 = arith.constant 0 : index
    %6 = vector.load %arg4[%c0_7, %c0_8] : memref<1x32xf32, #tpu.memory_space<vmem>>, vector<1x32xf32>
    %7 = vector.broadcast %6 : vector<1x32xf32> to vector<8x32xf32>
    %8 = arith.addf %5, %7 : vector<8x32xf32>
    %9 = vector.shape_cast %8 : vector<8x32xf32> to vector<1x8x32xf32>
    %c0_9 = arith.constant 0 : index
    %c0_10 = arith.constant 0 : index
    %10 = vector.load %arg5[%c0_9, %c0_10] : memref<32x64xf32, #tpu.memory_space<vmem>>, vector<32x64xf32>
    %cst_11 = arith.constant dense<0.000000e+00> : vector<16x64xf32>
    %11 = tpu.matmul %3, %10, %cst_11 {dimension_numbers = #tpu.dot_dimension_numbers<[1], [0], [0], [1], [0, 0, 1, 1], [], []>} : vector<16x32xf32>, vector<32x64xf32>, vector<16x64xf32> -> vector<16x64xf32>
    %c0_12 = arith.constant 0 : index
    %c0_13 = arith.constant 0 : index
    %12 = vector.load %arg6[%c0_12, %c0_13] : memref<1x64xf32, #tpu.memory_space<vmem>>, vector<1x64xf32>
    %13 = vector.broadcast %12 : vector<1x64xf32> to vector<16x64xf32>
    %14 = arith.addf %11, %13 : vector<16x64xf32>
    %15 = vector.shape_cast %14 : vector<16x64xf32> to vector<1x16x64xf32>
    %16 = vector.extract_strided_slice %9 {offsets = [0, 0, 0], sizes = [1, 8, 8], strides = [1, 1, 1]} : vector<1x8x32xf32> to vector<1x8x8xf32>
    %17 = vector.extract_strided_slice %15 {offsets = [0, 0, 0], sizes = [1, 16, 8], strides = [1, 1, 1]} : vector<1x16x64xf32> to vector<1x16x8xf32>
    %18 = vector.extract_strided_slice %15 {offsets = [0, 0, 32], sizes = [1, 16, 8], strides = [1, 1, 1]} : vector<1x16x64xf32> to vector<1x16x8xf32>
    "tpu.trace_start"() <{level = 10 : i32, message = "bnd,bmd->bnm"}> : () -> ()
    %cst_14 = arith.constant dense<0.000000e+00> : vector<1x8x16xf32>
    %19 = tpu.matmul %16, %17, %cst_14 {dimension_numbers = #tpu.dot_dimension_numbers<[2], [2], [1], [1], [0, 0, 0, 1, 1, 1], [0], [0]>} : vector<1x8x8xf32>, vector<1x16x8xf32>, vector<1x8x16xf32> -> vector<1x8x16xf32>
    "tpu.trace_stop"() : () -> ()
    %cst_15 = arith.constant 0.353553385 : f32
    %20 = vector.broadcast %cst_15 : f32 to vector<1x8x16xf32>
    %21 = arith.mulf %19, %20 : vector<1x8x16xf32>
    %cst_16 = arith.constant dense<0xFF800000> : vector<1x8xf32>
    %22 = vector.multi_reduction <maximumf>, %21, %cst_16 [2] : vector<1x8x16xf32> to vector<1x8xf32>
    %23 = vector.shape_cast %22 : vector<1x8xf32> to vector<1x8x1xf32>
    %24 = vector.broadcast %23 : vector<1x8x1xf32> to vector<1x8x16xf32>
    %25 = arith.subf %21, %24 : vector<1x8x16xf32>
    %26 = math.exp %25 : vector<1x8x16xf32>
    %cst_17 = arith.constant dense<0.000000e+00> : vector<1x8xf32>
    %27 = vector.multi_reduction <add>, %26, %cst_17 [2] : vector<1x8x16xf32> to vector<1x8xf32>
    %28 = vector.shape_cast %27 : vector<1x8xf32> to vector<1x8x1xf32>
    "tpu.trace_start"() <{level = 10 : i32, message = "bnm,bmd->bnd"}> : () -> ()
    %cst_18 = arith.constant dense<0.000000e+00> : vector<1x8x8xf32>
    %29 = tpu.matmul %26, %18, %cst_18 {dimension_numbers = #tpu.dot_dimension_numbers<[2], [1], [1], [2], [0, 0, 0, 1, 1, 2], [0], [0]>} : vector<1x8x16xf32>, vector<1x16x8xf32>, vector<1x8x8xf32> -> vector<1x8x8xf32>
    "tpu.trace_stop"() : () -> ()
    %30 = tpu.reciprocal %28 {approx = true} : vector<1x8x1xf32> -> vector<1x8x1xf32>
    %31 = vector.broadcast %30 : vector<1x8x1xf32> to vector<1x8x8xf32>
    %32 = arith.mulf %29, %31 : vector<1x8x8xf32>
    %c0_19 = arith.constant 0 : index
    %c0_20 = arith.constant 0 : index
    %c0_21 = arith.constant 0 : index
    %33 = vector.load %arg14[%c0_19, %c0_20, %c0_21] : memref<1x8x32xf32, #tpu.memory_space<vmem>>, vector<1x8x8xf32>
    tpu.vector_store %arg14[%c0_19, %c0_20, %c0_21], %32 {strides = array<i32>} : memref<1x8x32xf32, #tpu.memory_space<vmem>>, vector<1x8x8xf32>,
    %34 = vector.extract_strided_slice %9 {offsets = [0, 0, 8], sizes = [1, 8, 8], strides = [1, 1, 1]} : vector<1x8x32xf32> to vector<1x8x8xf32>
    %35 = vector.extract_strided_slice %15 {offsets = [0, 0, 8], sizes = [1, 16, 8], strides = [1, 1, 1]} : vector<1x16x64xf32> to vector<1x16x8xf32>
    %36 = vector.extract_strided_slice %15 {offsets = [0, 0, 40], sizes = [1, 16, 8], strides = [1, 1, 1]} : vector<1x16x64xf32> to vector<1x16x8xf32>
    "tpu.trace_start"() <{level = 10 : i32, message = "bnd,bmd->bnm"}> : () -> ()
    %cst_22 = arith.constant dense<0.000000e+00> : vector<1x8x16xf32>
    %37 = tpu.matmul %34, %35, %cst_22 {dimension_numbers = #tpu.dot_dimension_numbers<[2], [2], [1], [1], [0, 0, 0, 1, 1, 1], [0], [0]>} : vector<1x8x8xf32>, vector<1x16x8xf32>, vector<1x8x16xf32> -> vector<1x8x16xf32>
    "tpu.trace_stop"() : () -> ()
    %cst_23 = arith.constant 0.353553385 : f32
    %38 = vector.broadcast %cst_23 : f32 to vector<1x8x16xf32>
    %39 = arith.mulf %37, %38 : vector<1x8x16xf32>
    %cst_24 = arith.constant dense<0xFF800000> : vector<1x8xf32>
    %40 = vector.multi_reduction <maximumf>, %39, %cst_24 [2] : vector<1x8x16xf32> to vector<1x8xf32>
    %41 = vector.shape_cast %40 : vector<1x8xf32> to vector<1x8x1xf32>
    %42 = vector.broadcast %41 : vector<1x8x1xf32> to vector<1x8x16xf32>
    %43 = arith.subf %39, %42 : vector<1x8x16xf32>
    %44 = math.exp %43 : vector<1x8x16xf32>
    %cst_25 = arith.constant dense<0.000000e+00> : vector<1x8xf32>
    %45 = vector.multi_reduction <add>, %44, %cst_25 [2] : vector<1x8x16xf32> to vector<1x8xf32>
    %46 = vector.shape_cast %45 : vector<1x8xf32> to vector<1x8x1xf32>
    "tpu.trace_start"() <{level = 10 : i32, message = "bnm,bmd->bnd"}> : () -> ()
    %cst_26 = arith.constant dense<0.000000e+00> : vector<1x8x8xf32>
    %47 = tpu.matmul %44, %36, %cst_26 {dimension_numbers = #tpu.dot_dimension_numbers<[2], [1], [1], [2], [0, 0, 0, 1, 1, 2], [0], [0]>} : vector<1x8x16xf32>, vector<1x16x8xf32>, vector<1x8x8xf32> -> vector<1x8x8xf32>
    "tpu.trace_stop"() : () -> ()
    %48 = tpu.reciprocal %46 {approx = true} : vector<1x8x1xf32> -> vector<1x8x1xf32>
    %49 = vector.broadcast %48 : vector<1x8x1xf32> to vector<1x8x8xf32>
    %50 = arith.mulf %47, %49 : vector<1x8x8xf32>
    %c0_27 = arith.constant 0 : index
    %c0_28 = arith.constant 0 : index
    %c8 = arith.constant 8 : index
    %51 = vector.load %arg14[%c0_27, %c0_28, %c8] : memref<1x8x32xf32, #tpu.memory_space<vmem>>, vector<1x8x8xf32>
    tpu.vector_store %arg14[%c0_27, %c0_28, %c8], %50 {strides = array<i32>} : memref<1x8x32xf32, #tpu.memory_space<vmem>>, vector<1x8x8xf32>,
    %52 = vector.extract_strided_slice %9 {offsets = [0, 0, 16], sizes = [1, 8, 8], strides = [1, 1, 1]} : vector<1x8x32xf32> to vector<1x8x8xf32>
    %53 = vector.extract_strided_slice %15 {offsets = [0, 0, 16], sizes = [1, 16, 8], strides = [1, 1, 1]} : vector<1x16x64xf32> to vector<1x16x8xf32>
    %54 = vector.extract_strided_slice %15 {offsets = [0, 0, 48], sizes = [1, 16, 8], strides = [1, 1, 1]} : vector<1x16x64xf32> to vector<1x16x8xf32>
    "tpu.trace_start"() <{level = 10 : i32, message = "bnd,bmd->bnm"}> : () -> ()
    %cst_29 = arith.constant dense<0.000000e+00> : vector<1x8x16xf32>
    %55 = tpu.matmul %52, %53, %cst_29 {dimension_numbers = #tpu.dot_dimension_numbers<[2], [2], [1], [1], [0, 0, 0, 1, 1, 1], [0], [0]>} : vector<1x8x8xf32>, vector<1x16x8xf32>, vector<1x8x16xf32> -> vector<1x8x16xf32>
    "tpu.trace_stop"() : () -> ()
    %cst_30 = arith.constant 0.353553385 : f32
    %56 = vector.broadcast %cst_30 : f32 to vector<1x8x16xf32>
    %57 = arith.mulf %55, %56 : vector<1x8x16xf32>
    %cst_31 = arith.constant dense<0xFF800000> : vector<1x8xf32>
    %58 = vector.multi_reduction <maximumf>, %57, %cst_31 [2] : vector<1x8x16xf32> to vector<1x8xf32>
    %59 = vector.shape_cast %58 : vector<1x8xf32> to vector<1x8x1xf32>
    %60 = vector.broadcast %59 : vector<1x8x1xf32> to vector<1x8x16xf32>
    %61 = arith.subf %57, %60 : vector<1x8x16xf32>
    %62 = math.exp %61 : vector<1x8x16xf32>
    %cst_32 = arith.constant dense<0.000000e+00> : vector<1x8xf32>
    %63 = vector.multi_reduction <add>, %62, %cst_32 [2] : vector<1x8x16xf32> to vector<1x8xf32>
    %64 = vector.shape_cast %63 : vector<1x8xf32> to vector<1x8x1xf32>
    "tpu.trace_start"() <{level = 10 : i32, message = "bnm,bmd->bnd"}> : () -> ()
    %cst_33 = arith.constant dense<0.000000e+00> : vector<1x8x8xf32>
    %65 = tpu.matmul %62, %54, %cst_33 {dimension_numbers = #tpu.dot_dimension_numbers<[2], [1], [1], [2], [0, 0, 0, 1, 1, 2], [0], [0]>} : vector<1x8x16xf32>, vector<1x16x8xf32>, vector<1x8x8xf32> -> vector<1x8x8xf32>
    "tpu.trace_stop"() : () -> ()
    %66 = tpu.reciprocal %64 {approx = true} : vector<1x8x1xf32> -> vector<1x8x1xf32>
    %67 = vector.broadcast %66 : vector<1x8x1xf32> to vector<1x8x8xf32>
    %68 = arith.mulf %65, %67 : vector<1x8x8xf32>
    %c0_34 = arith.constant 0 : index
    %c0_35 = arith.constant 0 : index
    %c16 = arith.constant 16 : index
    %69 = vector.load %arg14[%c0_34, %c0_35, %c16] : memref<1x8x32xf32, #tpu.memory_space<vmem>>, vector<1x8x8xf32>
    tpu.vector_store %arg14[%c0_34, %c0_35, %c16], %68 {strides = array<i32>} : memref<1x8x32xf32, #tpu.memory_space<vmem>>, vector<1x8x8xf32>,
    %70 = vector.extract_strided_slice %9 {offsets = [0, 0, 24], sizes = [1, 8, 8], strides = [1, 1, 1]} : vector<1x8x32xf32> to vector<1x8x8xf32>
    %71 = vector.extract_strided_slice %15 {offsets = [0, 0, 24], sizes = [1, 16, 8], strides = [1, 1, 1]} : vector<1x16x64xf32> to vector<1x16x8xf32>
    %72 = vector.extract_strided_slice %15 {offsets = [0, 0, 56], sizes = [1, 16, 8], strides = [1, 1, 1]} : vector<1x16x64xf32> to vector<1x16x8xf32>
    "tpu.trace_start"() <{level = 10 : i32, message = "bnd,bmd->bnm"}> : () -> ()
    %cst_36 = arith.constant dense<0.000000e+00> : vector<1x8x16xf32>
    %73 = tpu.matmul %70, %71, %cst_36 {dimension_numbers = #tpu.dot_dimension_numbers<[2], [2], [1], [1], [0, 0, 0, 1, 1, 1], [0], [0]>} : vector<1x8x8xf32>, vector<1x16x8xf32>, vector<1x8x16xf32> -> vector<1x8x16xf32>
    "tpu.trace_stop"() : () -> ()
    %cst_37 = arith.constant 0.353553385 : f32
    %74 = vector.broadcast %cst_37 : f32 to vector<1x8x16xf32>
    %75 = arith.mulf %73, %74 : vector<1x8x16xf32>
    %cst_38 = arith.constant dense<0xFF800000> : vector<1x8xf32>
    %76 = vector.multi_reduction <maximumf>, %75, %cst_38 [2] : vector<1x8x16xf32> to vector<1x8xf32>
    %77 = vector.shape_cast %76 : vector<1x8xf32> to vector<1x8x1xf32>
    %78 = vector.broadcast %77 : vector<1x8x1xf32> to vector<1x8x16xf32>
    %79 = arith.subf %75, %78 : vector<1x8x16xf32>
    %80 = math.exp %79 : vector<1x8x16xf32>
    %cst_39 = arith.constant dense<0.000000e+00> : vector<1x8xf32>
    %81 = vector.multi_reduction <add>, %80, %cst_39 [2] : vector<1x8x16xf32> to vector<1x8xf32>
    %82 = vector.shape_cast %81 : vector<1x8xf32> to vector<1x8x1xf32>
    "tpu.trace_start"() <{level = 10 : i32, message = "bnm,bmd->bnd"}> : () -> ()
    %cst_40 = arith.constant dense<0.000000e+00> : vector<1x8x8xf32>
    %83 = tpu.matmul %80, %72, %cst_40 {dimension_numbers = #tpu.dot_dimension_numbers<[2], [1], [1], [2], [0, 0, 0, 1, 1, 2], [0], [0]>} : vector<1x8x16xf32>, vector<1x16x8xf32>, vector<1x8x8xf32> -> vector<1x8x8xf32>
    "tpu.trace_stop"() : () -> ()
    %84 = tpu.reciprocal %82 {approx = true} : vector<1x8x1xf32> -> vector<1x8x1xf32>
    %85 = vector.broadcast %84 : vector<1x8x1xf32> to vector<1x8x8xf32>
    %86 = arith.mulf %83, %85 : vector<1x8x8xf32>
    %c0_41 = arith.constant 0 : index
    %c0_42 = arith.constant 0 : index
    %c24 = arith.constant 24 : index
    %87 = vector.load %arg14[%c0_41, %c0_42, %c24] : memref<1x8x32xf32, #tpu.memory_space<vmem>>, vector<1x8x8xf32>
    tpu.vector_store %arg14[%c0_41, %c0_42, %c24], %86 {strides = array<i32>} : memref<1x8x32xf32, #tpu.memory_space<vmem>>, vector<1x8x8xf32>,
    %c0_43 = arith.constant 0 : index
    %c0_44 = arith.constant 0 : index
    %c0_45 = arith.constant 0 : index
    %88 = vector.load %arg14[%c0_43, %c0_44, %c0_45] : memref<1x8x32xf32, #tpu.memory_space<vmem>>, vector<1x8x32xf32>
    %89 = vector.shape_cast %88 : vector<1x8x32xf32> to vector<8x32xf32>
    %c0_46 = arith.constant 0 : index
    %c0_47 = arith.constant 0 : index
    %90 = vector.load %arg7[%c0_46, %c0_47] : memref<32x32xf32, #tpu.memory_space<vmem>>, vector<32x32xf32>
    %cst_48 = arith.constant dense<0.000000e+00> : vector<8x32xf32>
    %91 = tpu.matmul %89, %90, %cst_48 {dimension_numbers = #tpu.dot_dimension_numbers<[1], [0], [0], [1], [0, 0, 1, 1], [], []>} : vector<8x32xf32>, vector<32x32xf32>, vector<8x32xf32> -> vector<8x32xf32>
    %c0_49 = arith.constant 0 : index
    %c0_50 = arith.constant 0 : index
    %92 = vector.load %arg8[%c0_49, %c0_50] : memref<1x32xf32, #tpu.memory_space<vmem>>, vector<1x32xf32>
    %93 = vector.broadcast %92 : vector<1x32xf32> to vector<8x32xf32>
    %94 = arith.addf %91, %93 : vector<8x32xf32>
    %c0_51 = arith.constant 0 : index
    %c0_52 = arith.constant 0 : index
    %c0_53 = arith.constant 0 : index
    %95 = vector.load %arg15[%c0_51, %c0_52, %c0_53] : memref<1x8x64xf32, #tpu.memory_space<vmem>>, vector<1x8x32xf32>
    tpu.vector_store %arg15[%c0_51, %c0_52, %c0_53], %0 {strides = array<i32>} : memref<1x8x64xf32, #tpu.memory_space<vmem>>, vector<1x8x32xf32>,
    %96 = vector.shape_cast %94 : vector<8x32xf32> to vector<1x8x32xf32>
    %c0_54 = arith.constant 0 : index
    %c0_55 = arith.constant 0 : index
    %c32 = arith.constant 32 : index
    %97 = vector.load %arg15[%c0_54, %c0_55, %c32] : memref<1x8x64xf32, #tpu.memory_space<vmem>>, vector<1x8x32xf32>
    tpu.vector_store %arg15[%c0_54, %c0_55, %c32], %96 {strides = array<i32>} : memref<1x8x64xf32, #tpu.memory_space<vmem>>, vector<1x8x32xf32>,
    %c0_56 = arith.constant 0 : index
    %c0_57 = arith.constant 0 : index
    %c0_58 = arith.constant 0 : index
    %98 = vector.load %arg15[%c0_56, %c0_57, %c0_58] : memref<1x8x64xf32, #tpu.memory_space<vmem>>, vector<1x8x64xf32>
    %99 = vector.shape_cast %98 : vector<1x8x64xf32> to vector<8x64xf32>
    %c0_59 = arith.constant 0 : index
    %c0_60 = arith.constant 0 : index
    %100 = vector.load %arg9[%c0_59, %c0_60] : memref<64x64xf32, #tpu.memory_space<vmem>>, vector<64x64xf32>
    %cst_61 = arith.constant dense<0.000000e+00> : vector<8x64xf32>
    %101 = tpu.matmul %99, %100, %cst_61 {dimension_numbers = #tpu.dot_dimension_numbers<[1], [0], [0], [1], [0, 0, 1, 1], [], []>} : vector<8x64xf32>, vector<64x64xf32>, vector<8x64xf32> -> vector<8x64xf32>
    %c0_62 = arith.constant 0 : index
    %c0_63 = arith.constant 0 : index
    %102 = vector.load %arg10[%c0_62, %c0_63] : memref<1x64xf32, #tpu.memory_space<vmem>>, vector<1x64xf32>
    %103 = vector.broadcast %102 : vector<1x64xf32> to vector<8x64xf32>
    %104 = arith.addf %101, %103 : vector<8x64xf32>
    %cst_64 = arith.constant 0.000000e+00 : f32
    %105 = vector.broadcast %cst_64 : f32 to vector<8x64xf32>
    %106 = arith.maximumf %104, %105 : vector<8x64xf32>
    %c0_65 = arith.constant 0 : index
    %c0_66 = arith.constant 0 : index
    %107 = vector.load %arg11[%c0_65, %c0_66] : memref<64x32xf32, #tpu.memory_space<vmem>>, vector<64x32xf32>
    %cst_67 = arith.constant dense<0.000000e+00> : vector<8x32xf32>
    %108 = tpu.matmul %106, %107, %cst_67 {dimension_numbers = #tpu.dot_dimension_numbers<[1], [0], [0], [1], [0, 0, 1, 1], [], []>} : vector<8x64xf32>, vector<64x32xf32>, vector<8x32xf32> -> vector<8x32xf32>
    %c0_68 = arith.constant 0 : index
    %c0_69 = arith.constant 0 : index
    %109 = vector.load %arg12[%c0_68, %c0_69] : memref<1x32xf32, #tpu.memory_space<vmem>>, vector<1x32xf32>
    %110 = vector.broadcast %109 : vector<1x32xf32> to vector<8x32xf32>
    %111 = arith.addf %108, %110 : vector<8x32xf32>
    %112 = vector.shape_cast %111 : vector<8x32xf32> to vector<1x8x32xf32>
    %c0_70 = arith.constant 0 : index
    %c0_71 = arith.constant 0 : index
    %c0_72 = arith.constant 0 : index
    %113 = vector.load %arg13[%c0_70, %c0_71, %c0_72] : memref<1x8x32xf32, #tpu.memory_space<vmem>>, vector<1x8x32xf32>
    tpu.vector_store %arg13[%c0_70, %c0_71, %c0_72], %112 {strides = array<i32>} : memref<1x8x32xf32, #tpu.memory_space<vmem>>, vector<1x8x32xf32>,
    return
  }
  func.func @transform_0(%arg0: i32) -> (i32, i32, i32) {
    %c0_i32 = arith.constant 0 : i32
    %c0_i32_0 = arith.constant 0 : i32
    %c0_i32_1 = arith.constant 0 : i32
    return %arg0, %c0_i32, %c0_i32_0 : i32, i32, i32
  }
  func.func @transform_1(%arg0: i32) -> (i32, i32, i32) {
    %c0_i32 = arith.constant 0 : i32
    %c0_i32_0 = arith.constant 0 : i32
    %c0_i32_1 = arith.constant 0 : i32
    return %arg0, %c0_i32, %c0_i32_0 : i32, i32, i32
  }
  func.func @transform_2(%arg0: i32) -> (i32, i32) {
    %c0_i32 = arith.constant 0 : i32
    %c0_i32_0 = arith.constant 0 : i32
    %c0_i32_1 = arith.constant 0 : i32
    return %c0_i32, %c0_i32_0 : i32, i32
  }
  func.func @transform_3(%arg0: i32) -> (i32, i32) {
    %c0_i32 = arith.constant 0 : i32
    %c0_i32_0 = arith.constant 0 : i32
    %c0_i32_1 = arith.constant 0 : i32
    return %c0_i32, %c0_i32_0 : i32, i32
  }
  func.func @transform_4(%arg0: i32) -> (i32, i32) {
    %c0_i32 = arith.constant 0 : i32
    %c0_i32_0 = arith.constant 0 : i32
    %c0_i32_1 = arith.constant 0 : i32
    return %c0_i32, %c0_i32_0 : i32, i32
  }
  func.func @transform_5(%arg0: i32) -> (i32, i32) {
    %c0_i32 = arith.constant 0 : i32
    %c0_i32_0 = arith.constant 0 : i32
    %c0_i32_1 = arith.constant 0 : i32
    return %c0_i32, %c0_i32_0 : i32, i32
  }
  func.func @transform_6(%arg0: i32) -> (i32, i32) {
    %c0_i32 = arith.constant 0 : i32
    %c0_i32_0 = arith.constant 0 : i32
    %c0_i32_1 = arith.constant 0 : i32
    return %c0_i32, %c0_i32_0 : i32, i32
  }
  func.func @transform_7(%arg0: i32) -> (i32, i32) {
    %c0_i32 = arith.constant 0 : i32
    %c0_i32_0 = arith.constant 0 : i32
    %c0_i32_1 = arith.constant 0 : i32
    return %c0_i32, %c0_i32_0 : i32, i32
  }
  func.func @transform_8(%arg0: i32) -> (i32, i32) {
    %c0_i32 = arith.constant 0 : i32
    %c0_i32_0 = arith.constant 0 : i32
    %c0_i32_1 = arith.constant 0 : i32
    return %c0_i32, %c0_i32_0 : i32, i32
  }
  func.func @transform_9(%arg0: i32) -> (i32, i32) {
    %c0_i32 = arith.constant 0 : i32
    %c0_i32_0 = arith.constant 0 : i32
    %c0_i32_1 = arith.constant 0 : i32
    return %c0_i32, %c0_i32_0 : i32, i32
  }
  func.func @transform_10(%arg0: i32) -> (i32, i32) {
    %c0_i32 = arith.constant 0 : i32
    %c0_i32_0 = arith.constant 0 : i32
    %c0_i32_1 = arith.constant 0 : i32
    return %c0_i32, %c0_i32_0 : i32, i32
  }
  func.func @transform_11(%arg0: i32) -> (i32, i32) {
    %c0_i32 = arith.constant 0 : i32
    %c0_i32_0 = arith.constant 0 : i32
    %c0_i32_1 = arith.constant 0 : i32
    return %c0_i32, %c0_i32_0 : i32, i32
  }
  func.func @transform_12(%arg0: i32) -> (i32, i32, i32) {
    %c0_i32 = arith.constant 0 : i32
    %c0_i32_0 = arith.constant 0 : i32
    %c0_i32_1 = arith.constant 0 : i32
    return %arg0, %c0_i32, %c0_i32_0 : i32, i32, i32
  }
}

</mosaic_0001>

<bundles_post_ra>
// kernel: tpu_custom_call.1
= control target key start
LH: loop header
LB: loop body
LE: loop exit
PB: predicated region body
PF: predicated region fallthrough
CT: control target
= control target key end

     0   :  { %s2766_s0 = inlined_call_operand.hbm [shape: f32[2,8,32], index: 0, kind: input, shape index: {}]   ;;  %s2767_s1 = inlined_call_operand.vmem [shape: f32[2,16,32], index: 1, kind: input, shape index: {}]   ;;  %s2768_s2 = inlined_call_operand.hbm [shape: f32[32,32], index: 2, kind: input, shape index: {}]   ;;  %s2769_s3 = inlined_call_operand.vmem [shape: f32[1,32], index: 3, kind: input, shape index: {}]   ;;  %s2770_s4 = inlined_call_operand.hbm [shape: f32[32,64], index: 4, kind: input, shape index: {}]   ;;  %s2771_s5 = inlined_call_operand.vmem [shape: f32[1,64], index: 5, kind: input, shape index: {}]   ;;  %s2772_s6 = inlined_call_operand.hbm [shape: f32[32,32], index: 6, kind: input, shape index: {}]   ;;  %s2773_s7 = inlined_call_operand.vmem [shape: f32[1,32], index: 7, kind: input, shape index: {}]   ;;  %s2774_s8 = inlined_call_operand.vmem [shape: f32[64,64], index: 8, kind: input, shape index: {}]   ;;  %s2775_s9 = inlined_call_operand.vmem [shape: f32[1,64], index: 9, kind: input, shape index: {}]   ;;  %s2776_s10 = inlined_call_operand.vmem [shape: f32[64,32], index: 10, kind: input, shape index: {}]   ;;  %s2777_s11 = inlined_call_operand.vmem [shape: f32[1,32], index: 11, kind: input, shape index: {}]   ;;  %s2778_s12 = inlined_call_operand.hbm [shape: f32[2,8,32], index: 12, kind: output, shape index: {}]  }
   0x1   :  { %2787 = sst [smem:[#allocation21_spill]] %s2768_s2 }
   0x2   :  { %2788 = sst [smem:[#allocation22_spill]] %s2770_s4 }
   0x3   :  { %2789 = sst [smem:[#allocation23_spill]] %s2772_s6 }
   0x4   :  { %17 = vsyncpa [#allocation5], 0 }
   0x5   :  { %19 = vsyncpa [#allocation5 + $0x1], 0 }
   0x6   :  { %20 = vsyncpa [#allocation8], 0 }
   0x7   :  { %21 = vsyncpa [#allocation11], 0 }
   0x8   :  { %22 = vsyncpa [#allocation6], 0 }
   0x9   :  { %24 = vsyncpa [#allocation6 + $0x1], 0  ;;  %s2386_s21 = smov 0   ;;  %s2388_s22 = smov 0  }
   0xa   :  { %s2390_s23 = smov 0   ;;  %s2392_s24 = smov 0  }
   0xb LB: > { %2790 = sst [smem:[#allocation17_spill]] %s2295_s23  ;;  %s2407_s25 = sadd.s32 4294967295, %s2299_s24   ;;  %s2299_s24 = sphi %s2392_s24, %s2814_s24   ;;  %s2295_s23 = sphi %s2390_s23, %s2816_s23   ;;  %s2291_s22 = sphi %s2388_s22, %s2818_s22   ;;  %s2287_s21 = sphi %s2386_s21, %s2817_s21  }
   0xc   : > { %s1780_s26 = sadd.s32 4294967294, %s2299_s24   ;;  %p50_p0 = scmp.ne.s32.totalorder %s2291_s22, %s2287_s21 }
   0xd   : > { %p2779_p1 = scmp.eq.s32.totalorder %s2407_s25, 0  ;;  %p316_p3 = scmp.eq.s32.totalorder %s1780_s26, 1 }
   0xe   : > { %p1781_p5 = scmp.ge.s32.totalorder %s2299_s24, 1  ;;  %p323_p7 = scmp.lt.s32.totalorder %s2299_s24, 3 }
   0xf   : > { %p2416_p4 = por %p2779_p1, %p50_p0  ;;  %p2421_p6 = por %p316_p3, %p50_p0 }
  0x10   : > { %p2426_p8 = pnand %p1781_p5, %p323_p7  ;;  %s2301_s30 = smov [#allocation7]  }
  0x11   : > { %s2791_s27 = scalar_select %p2416_p4, 1, 0 }
  0x12   : > { %s2792_s28 = scalar_select %p2421_p6, 1, 0 }
  0x13   : > { %s2794_s29 = scalar_select %p2426_p8, 1, 0 }
  0x14   : > { %2793 = sst [smem:[#allocation18_spill]] %s2792_s28  ;;  %s335_s13 = sshll.u32 %s2301_s30, 4  ;;  %s336_s13 = int_to_ptr.vmem [resolvable:$true] %s335_s13 }
  0x15   : > { %p2029_p9 = pneg %p2426_p8  ;;  %s2302_s15 = smov [#allocation9]  }
  0x16   : > { %s351_s16 = sshll.u32 %s2302_s15, 4  ;;  %s2303_s17 = smov [#allocation10]   ;;  %s352_s16 = int_to_ptr.vmem [resolvable:$true] %s351_s16 }
  0x17   : > { %p2435_p11 = pnand %p2029_p9, %p2779_p1  ;;  %s367_s18 = sshll.u32 %s2303_s17, 4  ;;  %s368_s18 = int_to_ptr.vmem [resolvable:$true] %s367_s18 }
  0x18   : > { %s2132_s19 = scalar_lea.vmem %s336_s13, 512  ;;  %p2140_p5 = scmp.lt.s32.totalorder %s336_s13, %s336_s13 }
  0x19   : > { %p2123_p12 = pneg %p2435_p11  ;;  %p2133_p13 = scmp.ne.s32.totalorder %s336_s13, %s2132_s19 }
  0x1a   : > { %p2141_p7 = scmp.lt.s32.totalorder %s2132_s19, %s2132_s19 }
  0x1b   : > { %p2135_p0 = pnand %p2133_p13, %p2123_p12 }
  0x1c   : > { %p2142_p9 = por %p2141_p7, %p2140_p5 }
  0x1d   : > { %p2136_p3 = pneg %p2135_p0 }
  0x1f   : > { %p2143_p10 = pnand %p2142_p9, %p2136_p3 }
  0x21   : > { %2146 = shalt.err (!%p2143_p10)
}
  0x22   : > { %s2304_s20 = smov 128   ;;  %s2305_s26 = smov 8  }
  0x23   : > { %s2796_s2 = sld [smem:[#allocation21_spill]]  ;;  %s2158_s17 = scalar_lea.vmem %s352_s16, 512 }
  0x24   : > { %p2159_p1 = scmp.ne.s32.totalorder %s352_s16, %s2158_s17  ;;  %p2166_p2 = scmp.lt.s32.totalorder %s352_s16, %s352_s16 }
  0x25   : > { %p2167_p6 = scmp.lt.s32.totalorder %s2158_s17, %s2158_s17 }
  0x26   : > { %p2161_p13 = pnand %p2159_p1, %p2123_p12 }
  0x27   : > { %p2168_p5 = por %p2167_p6, %p2166_p2 }
  0x28   : > { %p2162_p0 = pneg %p2161_p13 }
  0x29   : > { %2032 = dma.hbm_to_vmem [thread:$0]  (!%p2435_p11), %s2796_s2, 512, %s336_s13, [#allocation8], %s2304_s20, %s2304_s20, %s2305_s26  }
  0x2a   : > { %p2169_p3 = pnand %p2168_p5, %p2162_p0 }
  0x2c   : > { %2172 = shalt.err (!%p2169_p3)
}
  0x2d   : > { %s2797_s4 = sld [smem:[#allocation22_spill]]  ;;  %s2184_s13 = scalar_lea.vmem %s368_s18, 512 }
  0x2e   : > { %p2185_p10 = scmp.ne.s32.totalorder %s368_s18, %s2184_s13  ;;  %p2192_p9 = scmp.lt.s32.totalorder %s368_s18, %s368_s18 }
  0x2f   : > { %p2193_p13 = scmp.lt.s32.totalorder %s2184_s13, %s2184_s13 }
  0x30   : > { %p2187_p7 = pnand %p2185_p10, %p2123_p12 }
  0x31   : > { %p2194_p4 = por %p2193_p13, %p2192_p9 }
  0x32   : > { %p2188_p1 = pneg %p2187_p7 }
  0x33   : > { %2035 = dma.hbm_to_vmem [thread:$0]  (!%p2435_p11), %s2797_s4, 512, %s352_s16, [#allocation8], %s2304_s20, %s2304_s20, %s2305_s26  }
  0x34   : > { %p2195_p2 = pnand %p2194_p4, %p2188_p1 }
  0x36   : > { %2198 = shalt.err (!%p2195_p2)
}
  0x37   : > { %s2798_s6 = sld [smem:[#allocation23_spill]]  ;;  %s2466_s28 = sadd.s32 1, %s2299_s24  }
  0x38   : > { %2799 = sst [smem:[#allocation19_spill]] %s2466_s28  ;;  %s34_s16 = ssub.s32 %s2299_s24, %s2466_s28 }
  0x39   : > { %s37_s14 = sadd.s32 1, %s2295_s23  ;;  %p35_p4 = scmp.eq.s32.totalorder %s34_s16, 0 }
  0x3a   : > { %p44_p6 = scmp.ne.s32.totalorder %s2295_s23, %s2291_s22  ;;  %p45_p12 = scmp.eq.s32.totalorder %s2299_s24, 0 }
  0x3b   : > { %p2050_p0 = scmp.lt.s32.totalorder %s2299_s24, 2  ;;  %p2801_p3 = scmp.eq.s32.totalorder %s2407_s25, 1 }
  0x3c   : > { %s2476_s17 = scalar_select %p35_p4, %s2295_s23, %s37_s14  }
  0x3d   : > { %2038 = dma.hbm_to_vmem [thread:$0]  (!%p2435_p11), %s2798_s6, 512, %s368_s18, [#allocation11], %s2304_s20, %s2304_s20, %s2305_s26  }
  0x3e   : > { %2800 = sst [smem:[#allocation20_spill]] %s2476_s17  ;;  %p46_p5 = por %p45_p12, %p44_p6 }
  0x3f   : > { %p2480_p10 = por %p2801_p3, %p44_p6  ;;  %s396_s13 = sand.u32 1, %s2295_s23  }
  0x40   : > { %s1787_s30 = sshll.u32 %s2299_s24, 7  ;;  %s1786_s18 = sshll.u32 %s396_s13, 3 }
  0x41   : > { %s2802_s19 = scalar_select %p2480_p10, 1, 0 }
  0x42   : > { %s2489_s15 = scalar_lea.hbm %s2766_s0, %s1787_s30  ;;  %s400_s16 = scalar_lea.vmem [#allocation4], %s1786_s18 }
  0x43   : > { %s407_s14 = sshll.u32 %s400_s16, 4  ;;  %p2491_p11 = pnand %p2050_p0, %p46_p5  ;;  %s408_s14 = int_to_ptr.vmem [resolvable:$true] %s407_s14 }
  0x44   : > { %s397_s4 = scalar_lea.sflag [#allocation5], %s396_s13  ;;  %s2199_s6 = scalar_lea.hbm %s2489_s15, 128 }
  0x45   : > { %p2200_p7 = scmp.ne.s32.totalorder %s2489_s15, %s2199_s6  ;;  %p2201_p1 = pneg %p2491_p11 }
  0x46   : > { %s2204_s26 = scalar_lea.hbm %s2766_s0, 256  ;;  %p2205_p2 = scmp.lt.s32.totalorder %s2489_s15, %s2766_s0 }
  0x47   : > { %p2202_p9 = pnand %p2201_p1, %p2200_p7  ;;  %p2206_p4 = scmp.lt.s32.totalorder %s2204_s26, %s2199_s6 }
  0x49   : > { %p2203_p13 = pneg %p2202_p9  ;;  %p2207_p6 = por %p2206_p4, %p2205_p2 }
  0x4b   : > { %p2208_p12 = pnand %p2207_p6, %p2203_p13 }
  0x4d   : > { %2211 = shalt.err (!%p2208_p12)
}
  0x4e   : > { %s2212_s16 = scalar_lea.vmem %s408_s14, 128  ;;  %s2306_s13 = smov [#allocation4]  }
  0x4f   : > { %p2213_p0 = scmp.ne.s32.totalorder %s408_s14, %s2212_s16  ;;  %s2217_s23 = sshll.u32 %s2306_s13, 4  ;;  %s2218_s23 = int_to_ptr.vmem [resolvable:$false] %s2217_s23 }
  0x50   : > { %s2219_s28 = scalar_lea.vmem %s2218_s23, 256  ;;  %p2220_p7 = scmp.lt.s32.totalorder %s408_s14, %s2218_s23 }
  0x51   : > { %p2215_p5 = pnand %p2213_p0, %p2201_p1  ;;  %p2221_p9 = scmp.lt.s32.totalorder %s2219_s28, %s2212_s16 }
  0x53   : > { %p2216_p3 = pneg %p2215_p5  ;;  %p2222_p10 = por %p2221_p9, %p2220_p7 }
  0x55   : > { %p2223_p8 = pnand %p2222_p10, %p2216_p3 }
  0x57   : > { %2226 = shalt.err (!%p2223_p8)
}
  0x58   : > { %2042 = dma.hbm_to_vmem [thread:$0]  (!%p2491_p11), %s2489_s15, 128, %s408_s14, %s397_s4  }
  0x59   : > { %p2804_p13 = scmp.ne.s32.totalorder %s2794_s29, 0 }
  0x5a   : > { %s2512_s6 = sand.u32 (!%p2804_p13), 1, %s2291_s22   ;;  %p2805_p10 = scmp.ne.s32.totalorder (!%p2804_p13), %s2791_s27, 0 }
  0x5b   : > { %424 = sbr.rel (%p2804_p13) target bundleno = 2432 (0x980), region = 68  ;;  %s1789_s17 = sshll.u32 (!%p2804_p13), %s2512_s6, 3 }
  0x5c   : > { %s427_s23 = scalar_lea.sflag (!%p2804_p13), [#allocation5], %s2512_s6  ;;  %s430_s28 = scalar_lea.vmem (!%p2804_p13), [#allocation4], %s1789_s17 }
  0x60   : > { %2270 = dma.done.wait (%p2805_p10), %s427_s23, 128  }
  0x61   : > { %2272 = vsyncadd (%p2805_p10), %s427_s23, 4294967168  ;;  %p2806_p8 = scmp.eq.s32.totalorder %s2407_s25, 0 }
  0x63   : > { %2274 = dma.done.wait (%p2806_p8), [#allocation8], 1024   ;;  %p2807_p11 = pmov %p2806_p8 }
  0x64   : > { %p2808_p1 = pmov %p2806_p8 }
  0x65   : > { %2276 = vsyncadd (%p2807_p11), [#allocation8], 4294966272 }
  0x66   : > { %2278 = dma.done.wait (%p2808_p1), [#allocation11], 512   ;;  %p2809_p2 = pmov %p2808_p1 }
  0x67   : > { %p488_p4 = scmp.lt.s32.totalorder %s2407_s25, 1  ;;  %v2307_v0 = vmov 0.0   ;;  %vm2308_vm0 = vmmov 0   ;;  %v584_v1 = vld [vmem:[#allocation9 + $0x18] sm:$0xff]  ;;  %v583_v2 = vld [vmem:[#allocation9 + $0x10] sm:$0xff]  ;;  %vm507_vm1 = vcmask 261120  }
  0x68   : > { %2280 = vsyncadd (%p2809_p2), [#allocation11], 4294966784  ;;  %1886 = vmatprep.subr.mxu0 %v2307_v0  ;;  %1894 = vmatprep.mubr.msk.f32.mxu0 %vm2308_vm0, %v2307_v0  ;;  %v499_v3 = vld [vmem:[#allocation7 + $0x18] sm:$0xff]  ;;  %v582_v5 = vld [vmem:[#allocation9 + $0x8] sm:$0xff]  ;;  %vm673_vm2 = vcmask 64512   ;;  %s2309_s18 = smov 96  }
  0x69   : > { %s489_s2 = scalar_select %p488_p4, %s2407_s25, 1  ;;  %1897 = vmatprep.subr.mxu1 %v584_v1  ;;  %1887 = vmatpush3.msra.mxu0 %v499_v3  ;;  %v498_v6 = vld [vmem:[#allocation7 + $0x10] sm:$0xff]  ;;  %v581_v8 = vld [vmem:[#allocation9] sm:$0xff]  ;;  %v497_v9 = vld [vmem:[#allocation7 + $0x8] sm:$0xff]  ;;  %vm754_vm3 = vcmask 130048   ;;  %vm1023_vm4 = vcmask 130112  }
  0x6a   : > { %1898 = vmatpush3.msra.mxu1 %v584_v1  ;;  %1888 = vmatprep.subr.mxu0 %v2307_v0  ;;  %v493_v7 = vld [vmem:[%s430_s28] sm:$0xff]  ;;  %v496_v11 = vld [vmem:[#allocation7] sm:$0xff]  ;;  %s2310_s16 = smov 120   ;;  %s2311_s13 = smov 112   ;;  %vm1202_vm5 = vcmask 195712   ;;  %vm1381_vm6 = vcmask 261312  }
  0x6b   : > { %s1827_s4 = sshll.u32 %s489_s2, 4  ;;  %1899 = vmatprep.subr.mxu1 %v583_v2  ;;  %1468 = vst.msk [vmem:[#allocation3] sm:$0xff] %vm507_vm1, %v493_v7  ;;  %1889 = vmatpush3.msra.mxu0 %v498_v6  ;;  %v1798_v12 = vld [vmem:[%s2771_s5] ss:$0 sm:$0xff]  ;;  %s2312_s23 = smov 88   ;;  %vm1473_vm7 = vcmask 523520  }
  0x6c   : > { %s492_s15 = scalar_lea.vmem %s2767_s1, %s1827_s4  ;;  %1900 = vmatpush3.msra.mxu1 %v583_v2  ;;  %1890 = vmatprep.subr.mxu0 %v2307_v0  ;;  %v1796_v18 = vld [vmem:[%s2769_s3] ss:$0 sm:$0xff]  ;;  %s2313_s28 = smov 80   ;;  %vm1491_vm8 = vcmask 523264  }
  0x6d   : > { %v494_v4 = vld [vmem:[%s492_s15] sm:$0xff]  ;;  %1901 = vmatprep.subr.mxu1 %v582_v5  ;;  %v495_v10 = vld [vmem:[%s492_s15 + $0x8] sm:$0xff]  ;;  %1891 = vmatpush3.msra.mxu0 %v497_v9  ;;  %s2314_s2 = smov 104   ;;  %s2315_s4 = smov 72  }
  0x6e   : > { %1905 = vmatprep.mubr.msk.f32.mxu1 %vm507_vm1, %v494_v4  ;;  %1902 = vmatpush3.msra.mxu1 %v582_v5  ;;  %s2316_s27 = smov 16   ;;  %s2317_s29 = smov 8  }
  0x6f   : > { %1903 = vmatprep.subr.mxu1 %v581_v8  ;;  %1892 = vmatprep.subr.mxu0 %v2307_v0  ;;  %s2318_s15 = smov 24   ;;  %s1656_s26 = scalar_lea.sflag [#allocation6], %s2512_s6 }
  0x70   : > { %1904 = vmatpush3.msra.mxu1 %v581_v8  ;;  %1893 = vmatpush3.msra.mxu0 %v496_v11  ;;  %p2810_p12 = scmp.ne.s32.totalorder %s2802_s19, 0 }
  0x71   : > { %1906 = vmatmul.mubr.msk.f32.vlgmr.msra.gmra.mxu1 %vm507_vm1, %v495_v10  ;;  %1895 = vmatmul.mubr.msk.f32.vlgmr.msra.gmra.mxu0 %vm507_vm1, %v493_v7 }
  0x72   : > { %1908 = vmatprep.subr.mxu0 %v2307_v0  ;;  %1912 = vmatprep.mubr.msk.f32.mxu0 %vm2308_vm0, %v2307_v0 }
  0x73   : > { %1915 = vmatprep.subr.mxu1 %v2307_v0  ;;  %1919 = vmatprep.mubr.msk.f32.mxu1 %vm2308_vm0, %v2307_v0 }
 0x131   : > { %v1907_v13 = vpop.f32.mrf.mxu1  ;;  %v577_v15 = vpop.f32.mrf.mxu0 }
 0x132   : > { %v2554_v14 = vadd.f32 %v1907_v13, %v1798_v12  ;;  %v2566_v20 = vadd.f32 %v1796_v18, %v577_v15 }
 0x133   : > { %v664_v16 = vpop.f32.mrf.mxu1  ;;  %v1896_v19 = vpop.f32.mrf.mxu0 }
 0x134   : > { %v2556_v17 = vadd.f32 %v1798_v12, %v664_v16  ;;  %1909 = vmatpush3.xpose.msk.msra.mxu0 %vm673_vm2, %v2554_v14 }
 0x135   : > { %1910 = vmatprep.subr.mxu0 %v2307_v0 }
 0x136   : > { %764 = vrot.lane.b32.xlu1 %v2556_v17, %s2309_s18 }
 0x138   : > { %1911 = vmatpush3.xpose.msk.msra.mxu0 %vm673_vm2, %v2556_v17 }
 0x139   : > { %1936 = vmatprep.subr.mxu0 %v2307_v0 }
 0x13a   : > { %850 = vrot.lane.b32.xlu1 %v2554_v14, %s2310_s16 }
 0x13b   : > { %1913 = vmatmul.mubr.msk.f32.vlgmr.msra.gmra.mxu0 %vm673_vm2, %v2566_v20 }
 0x13c   : > { %1940 = vmatprep.mubr.msk.f32.mxu0 %vm2308_vm0, %v2307_v0 }
 0x13e   : > { %848 = vrot.lane.b32.xlu1 %v2556_v17, %s2310_s16 }
 0x142   : > { %1029 = vrot.lane.b32.xlu1 %v2554_v14, %s2311_s13 }
 0x146   : > { %846 = vrot.lane.b32.xlu1 %v2566_v20, %s2310_s16 }
 0x14a   : > { %1027 = vrot.lane.b32.xlu1 %v2556_v17, %s2311_s13 }
 0x14e   : > { %1025 = vrot.lane.b32.xlu1 %v2566_v20, %s2311_s13 }
 0x152   : > { %938 = vrot.lane.b32.xlu1 %v2556_v17, %s2312_s23 }
 0x1a8   : > { %v765_v21 = vpop.permute.xlu1 %764 }
 0x1ac   : > { %v851_v22 = vpop.permute.xlu1 %850 }
 0x1b0   : > { %v849_v23 = vpop.permute.xlu1 %848 }
 0x1b4   : > { %v1030_v24 = vpop.permute.xlu1 %1029 }
 0x1b5   : > { %1937 = vmatpush3.xpose.msk.msra.mxu0 %vm673_vm2, %v1030_v24 }
 0x1b6   : > { %1938 = vmatprep.subr.mxu0 %v2307_v0 }
 0x1b8   : > { %v847_v25 = vpop.permute.xlu1 %846 }
 0x1bc   : > { %v1028_v26 = vpop.permute.xlu1 %1027 }
 0x1bd   : > { %1939 = vmatpush3.xpose.msk.msra.mxu0 %vm673_vm2, %v1028_v26 }
 0x1be   : > { %1957 = vmatprep.subr.mxu0 %v2307_v0 }
 0x1c0   : > { %v1026_v27 = vpop.permute.xlu1 %1025 }
 0x1c1   : > { %1941 = vmatmul.mubr.msk.f32.vlgmr.msra.gmra.mxu0 %vm673_vm2, %v1026_v27 }
 0x1c2   : > { %1961 = vmatprep.mubr.msk.f32.mxu0 %vm2308_vm0, %v2307_v0 }
 0x1c4   : > { %v939_v42 = vpop.permute.xlu1 %938 }
 0x1fb   : > { %v749_v28 = vpop.f32.mrf.mxu0 }
 0x1fc   : > { %v753_v29 = vmul.f32 0.35355338, %v749_v28 }
 0x1fd   : > { %v1914_v30 = vpop.f32.mrf.mxu0 }
 0x1fe   : > { %v755_v31 = vsel %vm754_vm3, %v753_v29, -inf  ;;  %v1386_v30 = vld [vmem:[#allocation10 + $0x10] sm:$0xff] }
 0x1ff   : > { %756 = vmax.xlane.f32.xlu0 %v755_v31  ;;  %v1385_v31 = vld [vmem:[#allocation10 + $0x8] sm:$0xff] }
 0x215   : > { %766 = vrot.lane.b32.xlu0 %v2554_v14, %s2309_s18 }
 0x219   : > { %940 = vrot.lane.b32.xlu0 %v2554_v14, %s2312_s23 }
 0x281   : > { %v1103_v32 = vpop.f32.mrf.mxu0 }
 0x282   : > { %v1107_v33 = vmul.f32 0.35355338, %v1103_v32  ;;  %v1384_v32 = vld [vmem:[#allocation10] sm:$0xff] }
 0x283   : > { %v1942_v34 = vpop.f32.mrf.mxu0 }
 0x284   : > { %v1108_v35 = vsel %vm754_vm3, %v1107_v33, -inf }
 0x285   : > { %1109 = vmax.xlane.f32.xlu1 %v1108_v35 }
 0x288   : > { %v757_v36 = vpop.xlane.xlu0 %756 }
 0x289   : > { %v758_v37 = vsub.f32 %v753_v29, %v757_v36  ;;  %v1387_v29 = vld [vmem:[#allocation10 + $0x18] sm:$0xff] }
 0x28b   : > { %v759_v38 = vmul.f32 1.442695, %v758_v37 }
 0x28c   : > { %v767_v39 = vpop.permute.xlu0 %766 }
 0x28d   : > { %2105 = vpow2.f32 %v759_v38  ;;  %1916 = vmatpush3.msra.mxu1 %v767_v39  ;;  %v1483_v39 = vld [vmem:[%s2774_s8 + $0x38] sm:$0xff] }
 0x28e   : > { %1917 = vmatprep.subr.mxu1 %v2307_v0 }
 0x28f   : > { %1918 = vmatpush3.msra.mxu1 %v765_v21 }
 0x290   : > { %1922 = vmatprep.subr.mxu1 %v2307_v0  ;;  %v941_v41 = vpop.permute.xlu0 %940 }
 0x296   : > { %1117 = vrot.lane.b32.xlu1 %v2556_v17, %s2313_s28 }
 0x29a   : > { %v2106_v40 = vpop.eup %2105  ;;  %1206 = vrot.lane.b32.xlu1 %v2556_v17, %s2314_s2 }
 0x29b   : > { %1920 = vmatmul.mubr.msk.f32.vlgmr.msra.gmra.mxu1 %vm754_vm3, %v2106_v40  ;;  %v761_v1 = vsel %vm754_vm3, %v2106_v40, 0.0  ;;  %v1482_v40 = vld [vmem:[%s2774_s8 + $0x30] sm:$0xff] }
 0x29c   : > { %1923 = vmatpush3.xpose.msk.msra.mxu1 %vm673_vm2, %v851_v22  ;;  %1926 = vmatprep.mubr.msk.f32.mxu1 %vm2308_vm0, %v2307_v0 }
 0x29d   : > { %1924 = vmatprep.subr.mxu1 %v2307_v0 }
 0x2a0   : > { %1925 = vmatpush3.xpose.msk.msra.mxu1 %vm673_vm2, %v849_v23 }
 0x2a1   : > { %1929 = vmatprep.subr.mxu1 %v2307_v0 }
 0x2a3   : > { %1927 = vmatmul.mubr.msk.f32.vlgmr.msra.gmra.mxu1 %vm673_vm2, %v847_v25 }
 0x2a4   : > { %1930 = vmatpush3.msra.mxu1 %v941_v41  ;;  %1933 = vmatprep.mubr.msk.f32.mxu1 %vm2308_vm0, %v2307_v0  ;;  %v1481_v41 = vld [vmem:[%s2774_s8 + $0x28] sm:$0xff] }
 0x2a5   : > { %1931 = vmatprep.subr.mxu1 %v2307_v0 }
 0x2a6   : > { %1932 = vmatpush3.msra.mxu1 %v939_v42  ;;  %v1480_v42 = vld [vmem:[%s2774_s8 + $0x20] sm:$0xff] }
 0x2a7   : > { %1943 = vmatprep.subr.mxu1 %v2307_v0 }
 0x30e   : > { %v1110_v49 = vpop.xlane.xlu1 %1109 }
 0x30f   : > { %v1111_v51 = vsub.f32 %v1107_v33, %v1110_v49  ;;  %v1572_v49 = vld [vmem:[%s2776_s10 + $0x30] sm:$0xff] }
 0x311   : > { %v1112_v55 = vmul.f32 1.442695, %v1111_v51  ;;  %v1571_v51 = vld [vmem:[%s2776_s10 + $0x28] sm:$0xff] }
 0x312   : > { %v1118_v62 = vpop.permute.xlu1 %1117 }
 0x316   : > { %v1207_v2 = vpop.permute.xlu1 %1206 }
 0x35b   : > { %v839_v43 = vpop.f32.mrf.mxu1 }
 0x35d   : > { %v1921_v44 = vpop.f32.mrf.mxu1 }
 0x35e   : > { %v1478_v44 = vld [vmem:[%s2774_s8 + $0x10] sm:$0xff] }
 0x363   : > { %v924_v45 = vpop.f32.mrf.mxu1 }
 0x364   : > { %v928_v46 = vmul.f32 0.35355338, %v924_v45  ;;  %v1477_v45 = vld [vmem:[%s2774_s8 + $0x8] sm:$0xff] }
 0x365   : > { %v1928_v47 = vpop.f32.mrf.mxu1 }
 0x366   : > { %v929_v48 = vsel %vm754_vm3, %v928_v46, -inf  ;;  %v1817_v47 = vld [vmem:[%s2773_s7] ss:$0 sm:$0xff] }
 0x367   : > { %930 = vmax.xlane.f32.xlu0 %v929_v48  ;;  %v1573_v48 = vld [vmem:[%s2776_s10 + $0x38] sm:$0xff] }
 0x37d   : > { %1119 = vrot.lane.b32.xlu0 %v2554_v14, %s2313_s28 }
 0x381   : > { %1208 = vrot.lane.b32.xlu0 %v2554_v14, %s2314_s2 }
 0x385   : > { %1204 = vrot.lane.b32.xlu0 %v2566_v20, %s2314_s2 }
 0x389   : > { %1298 = vrot.lane.b32.xlu0 %v2554_v14, %s2315_s4 }
 0x38d   : > { %1296 = vrot.lane.b32.xlu0 %v2556_v17, %s2315_s4 }
 0x3f0   : > { %v931_v50 = vpop.xlane.xlu0 %930 }
 0x3f1   : > { %v932_v52 = vsub.f32 %v928_v46, %v931_v50  ;;  %v1476_v46 = vld [vmem:[%s2774_s8] sm:$0xff] }
 0x3f3   : > { %v933_v53 = vmul.f32 1.442695, %v932_v52 }
 0x3f4   : > { %v1120_v54 = vpop.permute.xlu0 %1119 }
 0x3f5   : > { %2107 = vpow2.f32 %v933_v53 }
 0x3f6   : > { %2109 = vpow2.f32 %v1112_v55  ;;  %v1569_v55 = vld [vmem:[%s2776_s10 + $0x18] sm:$0xff] }
 0x3f8   : > { %v1209_v56 = vpop.permute.xlu0 %1208 }
 0x3fc   : > { %v1205_v57 = vpop.permute.xlu0 %1204 }
 0x400   : > { %v1299_v58 = vpop.permute.xlu0 %1298 }
 0x401   : > { %1958 = vmatpush3.msra.mxu0 %v1299_v58  ;;  %v1568_v58 = vld [vmem:[%s2776_s10 + $0x10] sm:$0xff] }
 0x402   : > { %v2108_v59 = vpop.eup %2107  ;;  %1959 = vmatprep.subr.mxu0 %v2307_v0 }
 0x403   : > { %1934 = vmatmul.mubr.msk.f32.vlgmr.msra.gmra.mxu1 %vm754_vm3, %v2108_v59  ;;  %v935_v60 = vsel %vm754_vm3, %v2108_v59, 0.0  ;;  %v2110_v63 = vpop.eup %2109  ;;  %v1567_v59 = vld [vmem:[%s2776_s10 + $0x8] sm:$0xff] }
 0x404   : > { %1944 = vmatpush3.msra.mxu1 %v1120_v54  ;;  %936 = vadd.xlane.f32.xlu0 %v935_v60  ;;  %v1297_v61 = vpop.permute.xlu0 %1296  ;;  %v1114_v17 = vsel %vm754_vm3, %v2110_v63, 0.0  ;;  %v1570_v54 = vld [vmem:[%s2776_s10 + $0x20] sm:$0xff] }
 0x405   : > { %1945 = vmatprep.subr.mxu1 %v2307_v0  ;;  %1960 = vmatpush3.msra.mxu0 %v1297_v61  ;;  %v1566_v60 = vld [vmem:[%s2776_s10] sm:$0xff] }
 0x406   : > { %1946 = vmatpush3.msra.mxu1 %v1118_v62  ;;  %1947 = vmatprep.mubr.msk.f32.mxu1 %vm2308_vm0, %v2307_v0  ;;  %v1819_v61 = vld [vmem:[%s2775_s9] ss:$0 sm:$0xff] }
 0x407   : > { %1950 = vmatprep.subr.mxu1 %v2307_v0  ;;  %1948 = vmatmul.mubr.msk.f32.vlgmr.msra.gmra.mxu1 %vm754_vm3, %v2110_v63 }
 0x408   : > { %1951 = vmatpush3.xpose.msk.msra.mxu1 %vm673_vm2, %v1209_v56  ;;  %762 = vadd.xlane.f32.xlu0 %v761_v1 }
 0x409   : > { %1952 = vmatprep.subr.mxu1 %v2307_v0  ;;  %1954 = vmatprep.mubr.msk.f32.mxu1 %vm2308_vm0, %v2307_v0 }
 0x40a   : > { %1964 = vmatprep.subr.mxu0 %v2307_v0 }
 0x40c   : > { %1953 = vmatpush3.xpose.msk.msra.mxu1 %vm673_vm2, %v1207_v2 }
 0x40d   : > { %1975 = vmatprep.subr.mxu1 %v2307_v0 }
 0x40f   : > { %1955 = vmatmul.mubr.msk.f32.vlgmr.msra.gmra.mxu1 %vm673_vm2, %v1205_v57 }
 0x410   : > { %1991 = vmatprep.mubr.msk.f32.mxu1 %vm2308_vm0, %v2307_v0  ;;  %1976 = vmatpush3.msra.mxu1 %v1483_v39 }
 0x411   : > { %1977 = vmatprep.subr.mxu1 %v2307_v0 }
 0x412   : > { %1978 = vmatpush3.msra.mxu1 %v1482_v40 }
 0x413   : > { %1979 = vmatprep.subr.mxu1 %v2307_v0 }
 0x414   : > { %1980 = vmatpush3.msra.mxu1 %v1481_v41 }
 0x415   : > { %1981 = vmatprep.subr.mxu1 %v2307_v0 }
 0x416   : > { %1982 = vmatpush3.msra.mxu1 %v1480_v42 }
 0x417   : > { %1983 = vmatprep.subr.mxu1 %v2307_v0 }
 0x48d   : > { %v937_v3 = vpop.xlane.xlu0 %936 }
 0x491   : > { %v763_v4 = vpop.xlane.xlu0 %762 }
 0x492   : > { %2111 = vrcp.f32 %v763_v4 }
 0x493   : > { %2113 = vrcp.f32 %v937_v3  ;;  %v1821_v3 = vld [vmem:[%s2777_s11] ss:$0 sm:$0xff] }
 0x49f   : > { %v2112_v5 = vpop.eup %2111 }
 0x4a0   : > { %v844_v6 = vmul.f32 %v2112_v5, %v839_v43  ;;  %v2114_v7 = vpop.eup %2113  ;;  %v1479_v43 = vld [vmem:[%s2774_s8 + $0x18] sm:$0xff] }
 0x4a1   : > { %1984 = vmatpush3.msra.mxu1 %v1479_v43 }
 0x4a2   : > { %845 = vst.msk [vmem:[#allocation2] sm:$0xff] %vm673_vm2, %v844_v6  ;;  %1985 = vmatprep.subr.mxu1 %v2307_v0 }
 0x4a3   : > { %1986 = vmatpush3.msra.mxu1 %v1478_v44 }
 0x4a4   : > { %1987 = vmatprep.subr.mxu1 %v2307_v0 }
 0x4a5   : > { %1988 = vmatpush3.msra.mxu1 %v1477_v45 }
 0x4a6   : > { %1989 = vmatprep.subr.mxu1 %v2307_v0 }
 0x4a7   : > { %1990 = vmatpush3.msra.mxu1 %v1476_v46 }
 0x4c3   : > { %v1013_v8 = vpop.f32.mrf.mxu1 }
 0x4c4   : > { %v1018_v9 = vmul.f32 %v2114_v7, %v1013_v8 }
 0x4c5   : > { %v1935_v10 = vpop.f32.mrf.mxu1 }
 0x4c7   : > { %v1192_v11 = vpop.f32.mrf.mxu1 }
 0x4c9   : > { %v1949_v12 = vpop.f32.mrf.mxu1 }
 0x4cf   : > { %v1282_v13 = vpop.f32.mrf.mxu1 }
 0x4d0   : > { %v1286_v14 = vmul.f32 0.35355338, %v1282_v13 }
 0x4d1   : > { %v1956_v15 = vpop.f32.mrf.mxu1 }
 0x4d2   : > { %v1287_v16 = vsel %vm754_vm3, %v1286_v14, -inf }
 0x4d3   : > { %1288 = vmax.xlane.f32.xlu1 %v1287_v16 }
 0x4d7   : > { %1115 = vadd.xlane.f32.xlu1 %v1114_v17 }
 0x55c   : > { %v1289_v18 = vpop.xlane.xlu1 %1288 }
 0x55d   : > { %v1290_v19 = vsub.f32 %v1286_v14, %v1289_v18 }
 0x55f   : > { %v1291_v20 = vmul.f32 1.442695, %v1290_v19 }
 0x560   : > { %v1116_v21 = vpop.xlane.xlu1 %1115 }
 0x561   : > { %2115 = vpow2.f32 %v1291_v20 }
 0x562   : > { %2117 = vrcp.f32 %v1116_v21 }
 0x56e   : > { %v2116_v22 = vpop.eup %2115 }
 0x56f   : > { %v2118_v23 = vpop.eup %2117  ;;  %1962 = vmatmul.mubr.msk.f32.vlgmr.msra.gmra.mxu0 %vm754_vm3, %v2116_v22  ;;  %v1293_v24 = vsel %vm754_vm3, %v2116_v22, 0.0 }
 0x570   : > { %1294 = vadd.xlane.f32.xlu1 %v1293_v24  ;;  %v1197_v25 = vmul.f32 %v2118_v23, %v1192_v11  ;;  %1972 = vmatprep.mubr.msk.f32.mxu0 %vm2308_vm0, %v2307_v0 }
 0x571   : > { %1965 = vmatpush3.msra.mxu0 %v1387_v29 }
 0x572   : > { %1199 = vrot.lane.b32.xlu0 %v1197_v25, %s2316_s27  ;;  %1966 = vmatprep.subr.mxu0 %v2307_v0  ;;  %s1824_s27 = sshll.u32 %s2407_s25, 7  ;;  %s2320_s25 = smov [#allocation12]  }
 0x573   : > { %1967 = vmatpush3.msra.mxu0 %v1386_v30  ;;  %s2728_s20 = scalar_lea.hbm %s2778_s12, %s1824_s27 }
 0x574   : > { %1968 = vmatprep.subr.mxu0 %v2307_v0 }
 0x575   : > { %1969 = vmatpush3.msra.mxu0 %v1385_v31 }
 0x576   : > { %1970 = vmatprep.subr.mxu0 %v2307_v0 }
 0x577   : > { %1971 = vmatpush3.msra.mxu0 %v1384_v32 }
 0x578   : > { %1994 = vmatprep.subr.mxu0 %v2307_v0 }
 0x581   : > { %1020 = vrot.lane.b32.xlu1 %v1018_v9, %s2317_s29  ;;  %s2319_s29 = smov 32  }
 0x5e4   : > { %v1200_v28 = vpop.permute.xlu0 %1199 }
 0x5f9   : > { %v1295_v26 = vpop.xlane.xlu1 %1294 }
 0x5fa   : > { %2119 = vrcp.f32 %v1295_v26 }
 0x5fd   : > { %v1021_v27 = vpop.permute.xlu1 %1020 }
 0x5fe   : > { %1024 = vst.msk [vmem:[#allocation2] sm:$0xff] %vm1023_vm4, %v1021_v27 }
 0x5ff   : > { %1203 = vst.msk [vmem:[#allocation2] sm:$0xff] %vm1202_vm5, %v1200_v28 }
 0x607   : > { %v2120_v33 = vpop.eup %2119 }
 0x62f   : > { %v1371_v34 = vpop.f32.mrf.mxu0 }
 0x630   : > { %v1376_v35 = vmul.f32 %v2120_v33, %v1371_v34 }
 0x631   : > { %v1963_v36 = vpop.f32.mrf.mxu0 }
 0x632   : > { %1378 = vrot.lane.b32.xlu1 %v1376_v35, %s2318_s15 }
 0x6a4   : > { %v1379_v37 = vpop.permute.xlu1 %1378 }
 0x6a5   : > { %1382 = vst.msk [vmem:[#allocation2] sm:$0xff] %vm1381_vm6, %v1379_v37 }
 0x6ac   : > { %v1383_v38 = vld [vmem:[#allocation2] sm:$0xff] }
 0x6ad   : > { %1973 = vmatmul.mubr.msk.f32.vlgmr.msra.gmra.mxu0 %vm507_vm1, %v1383_v38 }
 0x6ae   : > { %2010 = vmatprep.mubr.msk.f32.mxu0 %vm2308_vm0, %v2307_v0  ;;  %1995 = vmatpush3.msra.mxu0 %v1573_v48 }
 0x6af   : > { %1996 = vmatprep.subr.mxu0 %v2307_v0 }
 0x6b0   : > { %1997 = vmatpush3.msra.mxu0 %v1572_v49 }
 0x6b1   : > { %1998 = vmatprep.subr.mxu0 %v2307_v0 }
 0x6b2   : > { %1999 = vmatpush3.msra.mxu0 %v1571_v51 }
 0x6b3   : > { %2000 = vmatprep.subr.mxu0 %v2307_v0 }
 0x6b4   : > { %2001 = vmatpush3.msra.mxu0 %v1570_v54 }
 0x6b5   : > { %2002 = vmatprep.subr.mxu0 %v2307_v0 }
 0x6b6   : > { %2003 = vmatpush3.msra.mxu0 %v1569_v55 }
 0x6b7   : > { %2004 = vmatprep.subr.mxu0 %v2307_v0 }
 0x6b8   : > { %2005 = vmatpush3.msra.mxu0 %v1568_v58 }
 0x6b9   : > { %2006 = vmatprep.subr.mxu0 %v2307_v0 }
 0x6ba   : > { %2007 = vmatpush3.msra.mxu0 %v1567_v59 }
 0x6bb   : > { %2008 = vmatprep.subr.mxu0 %v2307_v0 }
 0x6bc   : > { %2009 = vmatpush3.msra.mxu0 %v1566_v60 }
 0x76d   : > { %v1464_v50 = vpop.f32.mrf.mxu0 }
 0x76e   : > { %v1465_v52 = vadd.f32 %v1817_v47, %v1464_v50 }
 0x76f   : > { %v1974_v53 = vpop.f32.mrf.mxu0 }
 0x770   : > { %1470 = vrot.lane.b32.xlu1 %v1465_v52, %s2319_s29  ;;  %s487_s29 = scalar_lea.vmem [#allocation12], %s1789_s17  ;;  %s2231_s17 = sshll.u32 %s2320_s25, 4  ;;  %s2232_s17 = int_to_ptr.vmem [resolvable:$false] %s2231_s17 }
 0x771   : > { %s1669_s15 = sshll.u32 %s487_s29, 4  ;;  %s2233_s16 = scalar_lea.vmem %s2232_s17, 256  ;;  %s1670_s15 = int_to_ptr.vmem [resolvable:$true] %s1669_s15 }
 0x772   : > { %s2227_s18 = scalar_lea.vmem %s1670_s15, 128  ;;  %p2234_p3 = scmp.lt.s32.totalorder %s1670_s15, %s2232_s17 }
 0x773   : > { %p2228_p6 = scmp.ne.s32.totalorder %s1670_s15, %s2227_s18  ;;  %p2235_p7 = scmp.lt.s32.totalorder %s2233_s16, %s2227_s18 }
 0x775   : > { %p2229_p0 = pnand %p2228_p6, %p2810_p12  ;;  %p2236_p9 = por %p2235_p7, %p2234_p3 }
 0x777   : > { %p2230_p5 = pneg %p2229_p0 }
 0x779   : > { %p2237_p13 = pnand %p2236_p9, %p2230_p5 }
 0x7e2   : > { %v1471_v56 = vpop.permute.xlu1 %1470 }
 0x7e3   : > { %1474 = vst.msk [vmem:[#allocation3] sm:$0xff] %vm1473_vm7, %v1471_v56 }
 0x7ea   : > { %v1475_v57 = vld [vmem:[#allocation3] sm:$0xff] }
 0x7eb   : > { %1992 = vmatmul.mubr.msk.f32.vlgmr.msra.gmra.mxu1 %vm1491_vm8, %v1475_v57 }
 0x8ab   : > { %v1561_v62 = vpop.f32.mrf.mxu1 }
 0x8ac   : > { %v1562_v63 = vadd.f32 %v1819_v61, %v1561_v62 }
 0x8ad   : > { %v1993_v1 = vpop.f32.mrf.mxu1 }
 0x8ae   : > { %v1565_v2 = vmax.f32 %v1562_v63, 0.0 }
 0x8b0   : > { %2011 = vmatmul.mubr.msk.f32.vlgmr.msra.gmra.mxu0 %vm1491_vm8, %v1565_v2 }
 0x970   : > { %v1650_v0 = vpop.f32.mrf.mxu0 }
 0x971   : > { %v1651_v4 = vadd.f32 %v1821_v3, %v1650_v0 }
 0x972   : > { %v2012_v5 = vpop.f32.mrf.mxu0 }
 0x973   : > { %1654 = vst.msk [vmem:[%s487_s29] sm:$0xff] %vm507_vm1, %v1651_v4 }
 0x974   : > { %2240 = shalt.err (!%p2237_p13)
}
 0x975   : > { %s2241_s13 = scalar_lea.hbm %s2728_s20, 128  ;;  %s2245_s28 = scalar_lea.hbm %s2778_s12, 256 }
 0x976   : > { %p2242_p10 = scmp.ne.s32.totalorder %s2728_s20, %s2241_s13  ;;  %p2246_p1 = scmp.lt.s32.totalorder %s2728_s20, %s2778_s12 }
 0x977   : > { %p2247_p2 = scmp.lt.s32.totalorder %s2245_s28, %s2241_s13 }
 0x978   : > { %p2243_p8 = pnand %p2242_p10, %p2810_p12 }
 0x979   : > { %p2248_p4 = por %p2247_p2, %p2246_p1 }
 0x97a   : > { %p2244_p11 = pneg %p2243_p8 }
 0x97c   : > { %p2249_p6 = pnand %p2248_p4, %p2244_p11 }
 0x97e   : > { %2252 = shalt.err (!%p2249_p6)
}
 0x97f   : > { %2027 = dma.vmem_to_hbm [thread:$0]  (%p2810_p12), %s1670_s15, 128, %s2728_s20, %s1656_s26  }
 0x980 PF: > { %s2811_s27 = sld [smem:[#allocation18_spill]]  ;;  %s1681_s29 = sand.u32 1, %s2287_s21  }
 0x981   : > { %p2813_p5 = scmp.ge.s32.totalorder %s2299_s24, 2  ;;  %s1682_s14 = scalar_lea.sflag [#allocation6], %s1681_s29 }
 0x986   : > { %p2812_p0 = scmp.ne.s32.totalorder %s2811_s27, 0 }
 0x988   : > { %p2044_p3 = pnand %p2813_p5, %p2812_p0 }
 0x98a   : > { %p2045_p7 = pneg %p2044_p3 }
 0x98c   : > { %2282 = dma.done.wait (%p2045_p7), %s1682_s14, 128  }
 0x98d   : > { %2284 = vsyncadd (%p2045_p7), %s1682_s14, 4294967168  ;;  %s2814_s24 = sld [smem:[#allocation19_spill]]  ;;  %s2817_s21 = smov %s2291_s22 }
 0x98e   : > { %s2815_s30 = sld [smem:[#allocation17_spill]] }
 0x98f   : > { %s2816_s23 = sld [smem:[#allocation20_spill]] }
 0x993   : > { %p27_p9 = scmp.ge.s32.totalorder %s2814_s24, 4  }
 0x994   : > { %s2818_s22 = smov %s2815_s30 }
 0x995   :  { %29 = sbr.rel (!%p27_p9) target bundleno = 11 (0xb), region = 128 }
 0x99a   :  { %1687 = vsyncpa [#allocation5], 1 }
 0x99b   :  { %1689 = vsyncpa [#allocation5 + $0x1], 1 }
 0x99c   :  { %1690 = vsyncpa [#allocation8], 1 }
 0x99d   :  { %1691 = vsyncpa [#allocation11], 1 }
 0x99e   :  { %1692 = vsyncpa [#allocation6], 1 }
 0x99f   :  { %1694 = vsyncpa [#allocation6 + $0x1], 1 }

</bundles_post_ra>
